<compile_context>
chip_gen: v6e
topology: v6e:2x2x1
jax: 0.10.0
libtpu: 0.0.40
codegen_flags: <defaults>
</compile_context>

<pallas_src>
import functools

import jax
import jax.numpy as jnp
from jax.experimental import pallas as pl
from jax.experimental.pallas import tpu as pltpu


def _round_up(x, m):
    return (x + m - 1) // m * m


def _vmem_limit_bytes():
    # Generation-aware VMEM budget: ~3/4 of physical, capped at 100 MiB.
    try:
        cap = pltpu.get_tpu_info().vmem_capacity_bytes
        return min(int(cap) * 3 // 4, 100 * 1024 * 1024)
    except Exception:
        return None  # fall back to the compiler's scoped default


# ---------------------------------------------------------------------------
# Kernels
# ---------------------------------------------------------------------------
def _mingru_kernel_fullk(x_ref, w_ref, hx_ref, hy_ref, cy_ref, *, tn):
    """Grid = (batch tiles, hidden tiles); full input reduction per step.

    w_ref is a fused [W_in_tile | W_cell_tile] slab of shape (D_p, 2*tn): one
    bf16 MXU matmul yields both gates; the split is a static 128-aligned lane
    slice (no XLU).
    """
    gates = jnp.dot(x_ref[...], w_ref[...], preferred_element_type=jnp.float32)
    ingate = jax.nn.sigmoid(gates[:, :tn])          # EUP
    cellgate = gates[:, tn:]
    hx = hx_ref[...].astype(jnp.float32)
    hy = hx * (1.0 - ingate) + ingate * cellgate    # VPU blend
    hy_ref[...] = hy.astype(hy_ref.dtype)
    cy_ref[...] = cellgate.astype(cy_ref.dtype)


def _mingru_kernel_ktiled(x_ref, w_ref, hx_ref, hy_ref, cy_ref, *, tn):
    """Grid = (batch, hidden, input-reduction).  Accumulates straight into the
    f32 output tiles (resident across k since their index_map ignores k), so
    no VMEM scratch accumulators are needed."""
    k = pl.program_id(2)

    @pl.when(k == 0)
    def _():
        hy_ref[...] = jnp.zeros_like(hy_ref)
        cy_ref[...] = jnp.zeros_like(cy_ref)

    gates = jnp.dot(x_ref[...], w_ref[...], preferred_element_type=jnp.float32)
    hy_ref[...] += gates[:, :tn]      # ingate pre-activation
    cy_ref[...] += gates[:, tn:]      # cellgate

    @pl.when(k == pl.num_programs(2) - 1)
    def _():
        ingate = jax.nn.sigmoid(hy_ref[...])
        cellgate = cy_ref[...]
        hx = hx_ref[...].astype(jnp.float32)
        hy_ref[...] = hx * (1.0 - ingate) + ingate * cellgate


# ---------------------------------------------------------------------------
# Parameter prep (one-time, out of the per-call path)
# ---------------------------------------------------------------------------
def prepare_params(w, *, compute_dtype=jnp.bfloat16, max_tn=512):
    """w: (2*num_hidden, input_size) -- PyTorch Linear weight layout.

    Returns (w_pack, meta).  Both gate weights are transposed to (D, H), cast
    to `compute_dtype`, zero-padded to (D_p, H_p), and interleaved per hidden
    tile into one (D_p, 2*H_p) slab: tile j occupies columns
    [2*j*tn, 2*j*tn+tn) for W_in and [2*j*tn+tn, 2*(j+1)*tn) for W_cell, so
    the kernel needs a single matmul and one weight DMA stream per tile.
    """
    two_h, D = w.shape
    H = two_h // 2

    D_p = _round_up(D, 128)
    H_p = _round_up(H, 128)

    tn = min(H_p, max_tn)
    while H_p % tn:
        tn -= 128
    # Give the 'parallel' hidden axis >= 2 tiles when possible so both v7x
    # TensorCores get work even with a single batch tile (harmless on v5e/v6e).
    if H_p // tn < 2 and H_p >= 256:
        tn2 = (H_p // 2) // 128 * 128
        while tn2 >= 128 and H_p % tn2:
            tn2 -= 128
        if tn2 >= 128:
            tn = tn2

    w_in_t = w[:H, :].T.astype(compute_dtype)     # (D, H)
    w_cell_t = w[H:, :].T.astype(compute_dtype)   # (D, H)
    w_in_p = jnp.zeros((D_p, H_p), compute_dtype).at[:D, :H].set(w_in_t)
    w_cell_p = jnp.zeros((D_p, H_p), compute_dtype).at[:D, :H].set(w_cell_t)
    n_tiles = H_p // tn
    w_pack = jnp.concatenate(
        [w_in_p.reshape(D_p, n_tiles, tn), w_cell_p.reshape(D_p, n_tiles, tn)],
        axis=2,
    ).reshape(D_p, 2 * H_p)

    meta = dict(D=D, H=H, D_p=D_p, H_p=H_p, tn=tn)
    return w_pack, meta


def _weight_spec(block_shape, index_map, *, extra_buffering):
    # Triple-buffer the weight stream when the LHS tile is tiny (DMA exposed).
    if extra_buffering:
        try:
            return pl.BlockSpec(block_shape, index_map,
                                pipeline_mode=pl.Buffered(3))
        except Exception:
            pass
    return pl.BlockSpec(block_shape, index_map)


# ---------------------------------------------------------------------------
# Forward
# ---------------------------------------------------------------------------
@functools.partial(jax.jit, static_argnames=("D", "H", "D_p", "H_p", "tn"))
def _mingru_forward(x, hx, w_pack, *, D, H, D_p, H_p, tn):
    B = x.shape[0]
    cdtype = w_pack.dtype
    csize = jnp.dtype(cdtype).itemsize
    out_dtype = jnp.result_type(x.dtype, hx.dtype)

    # Batch tile: sublane-aligned for the compute dtype (bf16 packs 2 rows per
    # sublane -> multiples of 16); adaptive so mid-size batches aren't padded
    # all the way up to 256.
    row_align = 16 if csize == 2 else 8
    if B <= 256:
        tm = _round_up(B, row_align)
        B_p = tm
    else:
        tm, B_p = None, None
        for cand in (256, 128, 64):
            bp = _round_up(B, cand)
            if B_p is None or bp < B_p:
                tm, B_p = cand, bp

    vmem_limit = _vmem_limit_bytes()
    budget = vmem_limit or (32 * 1024 * 1024)
    hx_size = jnp.dtype(hx.dtype).itemsize

    # Collapse the K axis when the full-K, double-buffered working set fits.
    fullk_bytes = (2 * tm * D_p * csize            # x
                   + 2 * D_p * (2 * tn) * csize    # fused weight
                   + 2 * tm * tn * hx_size         # hx
                   + 2 * 2 * tm * tn * 4)          # hy + cy (f32)
    use_full_k = fullk_bytes <= int(budget * 0.8)

    if use_full_k:
        tk = D_p
    else:
        tk = 128
        for cand in (512, 256):
            cand_bytes = (2 * tm * cand * csize
                          + 3 * cand * (2 * tn) * csize   # weight, Buffered(3)
                          + 2 * tm * tn * hx_size
                          + 2 * 2 * tm * tn * 4)
            if D_p % cand == 0 and cand_bytes <= int(budget * 0.8):
                tk = cand
                break

    # Pad only when necessary (zero K rows keep the matmul exact).
    x_c = x.astype(cdtype)
    if (B_p, D_p) == x.shape:
        x_p = x_c
    else:
        x_p = jnp.zeros((B_p, D_p), cdtype).at[:B, :D].set(x_c)
    if (B_p, H_p) == hx.shape:
        hx_p = hx
    else:
        hx_p = jnp.zeros((B_p, H_p), hx.dtype).at[:B, :H].set(hx)

    out_shapes = (jax.ShapeDtypeStruct((B_p, H_p), jnp.float32),
                  jax.ShapeDtypeStruct((B_p, H_p), jnp.float32))

    if use_full_k:
        grid = (B_p // tm, H_p // tn)
        kernel = functools.partial(_mingru_kernel_fullk, tn=tn)
        in_specs = [
            pl.BlockSpec((tm, D_p), lambda i, j: (i, 0)),        # x
            pl.BlockSpec((D_p, 2 * tn), lambda i, j: (0, j)),    # fused W
            pl.BlockSpec((tm, tn), lambda i, j: (i, j)),         # hx
        ]
        out_specs = [pl.BlockSpec((tm, tn), lambda i, j: (i, j)),
                     pl.BlockSpec((tm, tn), lambda i, j: (i, j))]
        semantics = ("parallel", "parallel")
    else:
        grid = (B_p // tm, H_p // tn, D_p // tk)
        kernel = functools.partial(_mingru_kernel_ktiled, tn=tn)
        in_specs = [
            pl.BlockSpec((tm, tk), lambda i, j, k: (i, k)),      # x
            _weight_spec((tk, 2 * tn), lambda i, j, k: (k, j),
                         extra_buffering=(tm <= 64)),            # fused W
            pl.BlockSpec((tm, tn), lambda i, j, k: (i, j)),      # hx
        ]
        out_specs = [pl.BlockSpec((tm, tn), lambda i, j, k: (i, j)),
                     pl.BlockSpec((tm, tn), lambda i, j, k: (i, j))]
        semantics = ("parallel", "parallel", "arbitrary")

    hy_p, cy_p = pl.pallas_call(
        kernel,
        out_shape=out_shapes,
        grid_spec=pltpu.PrefetchScalarGridSpec(
            num_scalar_prefetch=0,
            grid=grid,
            in_specs=in_specs,
            out_specs=out_specs,
        ),
        compiler_params=pltpu.CompilerParams(
            dimension_semantics=semantics,
            vmem_limit_bytes=vmem_limit,
        ),
    )(x_p, w_pack, hx_p)

    hy = hy_p if (B_p, H_p) == (B, H) else hy_p[:B, :H]
    cy = cy_p if (B_p, H_p) == (B, H) else cy_p[:B, :H]
    if out_dtype != jnp.float32:
        hy = hy.astype(out_dtype)
        cy = cy.astype(out_dtype)
    return hy, cy


def mingru_cell(x, hx, params):
    """Pallas minGRUcell forward.

    x: (B, input_size); hx: array (B, num_hidden) or a tuple/list like the
    PyTorch module receives (uses hx[0]); params from prepare_params.
    """
    if isinstance(hx, (tuple, list)):
        hx = hx[0]
    w_pack, meta = params
    return _mingru_forward(x, hx, w_pack, **meta)


def _reference(x, w, hx):
    gates = x @ w.T
    H = w.shape[0] // 2
    ingate = jax.nn.sigmoid(gates[:, :H])
    cellgate = gates[:, H:]
    hy = hx * (1.0 - ingate) + ingate * cellgate
    return hy, cellgate


if __name__ == "__main__":
    key = jax.random.PRNGKey(0)
    B, input_size, num_hidden = 8, 16, 32

    k_x, k_h, k_w = jax.random.split(key, 3)
    x = jax.random.normal(k_x, (B, input_size), dtype=jnp.float32)
    hx0 = jax.random.normal(k_h, (B, num_hidden), dtype=jnp.float32)

    # Deterministic init mimicking torch.nn.Linear default:
    # U(-1/sqrt(input_size), 1/sqrt(input_size)), weight shape (2H, input_size).
    bound = 1.0 / (input_size ** 0.5)
    w = jax.random.uniform(
        k_w, (2 * num_hidden, input_size),
        minval=-bound, maxval=bound, dtype=jnp.float32)

    # One-time weight prep (per-gate split + transpose + bf16 cast + fused
    # per-tile packing), out of the per-call path.
    params = prepare_params(w)

    # PyTorch forward takes hx as a tuple-like and uses hx[0].
    hy, cy = mingru_cell(x, (hx0,), params)
    jax.block_until_ready((hy, cy))

    # f32 reference with PyTorch semantics; tolerance loosened because the
    # kernel runs the matmul with bf16 operands (f32 accumulation).
    hy_ref, cy_ref = _reference(x, w, hx0)
    assert hy.shape == (B, num_hidden) and cy.shape == (B, num_hidden)
    assert jnp.allclose(hy, hy_ref, atol=2e-2, rtol=2e-2), \
        float(jnp.max(jnp.abs(hy - hy_ref)))
    assert jnp.allclose(cy, cy_ref, atol=2e-2, rtol=2e-2), \
        float(jnp.max(jnp.abs(cy - cy_ref)))

    print("KERNEL_OK")
</pallas_src>

<mosaic_0001>
module attributes {stable_mosaic.version = 11 : i64} {
  func.func @_mingru_kernel_fullk(%arg0: i32, %arg1: i32, %arg2: memref<16x128xbf16, #tpu.memory_space<vmem>>, %arg3: memref<128x256xbf16, #tpu.memory_space<vmem>>, %arg4: memref<16x128xf32, #tpu.memory_space<vmem>>, %arg5: memref<16x128xf32, #tpu.memory_space<vmem>>, %arg6: memref<16x128xf32, #tpu.memory_space<vmem>>) attributes {dimension_semantics = [#tpu.dimension_semantics<parallel>, #tpu.dimension_semantics<parallel>], iteration_bounds = array<i64: 1, 1>, scalar_prefetch = 0 : i64, scratch_operands = 0 : i64, tpu.core_type = #tpu.core_type<tc>, window_params = [{transform_indices = @transform_0, window_bounds = array<i64: 16, 128>}, {transform_indices = @transform_1, window_bounds = array<i64: 128, 256>}, {transform_indices = @transform_2, window_bounds = array<i64: 16, 128>}, {transform_indices = @transform_3, window_bounds = array<i64: 16, 128>}, {transform_indices = @transform_4, window_bounds = array<i64: 16, 128>}]} {
    %c0 = arith.constant 0 : index
    %c0_0 = arith.constant 0 : index
    %0 = vector.load %arg2[%c0, %c0_0] : memref<16x128xbf16, #tpu.memory_space<vmem>>, vector<16x128xbf16>
    %c0_1 = arith.constant 0 : index
    %c0_2 = arith.constant 0 : index
    %1 = vector.load %arg3[%c0_1, %c0_2] : memref<128x256xbf16, #tpu.memory_space<vmem>>, vector<128x256xbf16>
    %cst = arith.constant dense<0.000000e+00> : vector<16x256xf32>
    %2 = tpu.matmul %0, %1, %cst {dimension_numbers = #tpu.dot_dimension_numbers<[1], [0], [0], [1], [0, 0, 1, 1], [], []>} : vector<16x128xbf16>, vector<128x256xbf16>, vector<16x256xf32> -> vector<16x256xf32>
    %3 = vector.extract_strided_slice %2 {offsets = [0, 0], sizes = [16, 128], strides = [1, 1]} : vector<16x256xf32> to vector<16x128xf32>
    %4 = arith.negf %3 : vector<16x128xf32>
    %5 = math.exp %4 : vector<16x128xf32>
    %cst_3 = arith.constant 1.000000e+00 : f32
    %6 = vector.broadcast %cst_3 : f32 to vector<16x128xf32>
    %7 = arith.addf %6, %5 : vector<16x128xf32>
    %8 = arith.divf %6, %7 : vector<16x128xf32>
    %9 = vector.extract_strided_slice %2 {offsets = [0, 128], sizes = [16, 128], strides = [1, 1]} : vector<16x256xf32> to vector<16x128xf32>
    %c0_4 = arith.constant 0 : index
    %c0_5 = arith.constant 0 : index
    %10 = vector.load %arg4[%c0_4, %c0_5] : memref<16x128xf32, #tpu.memory_space<vmem>>, vector<16x128xf32>
    %cst_6 = arith.constant 1.000000e+00 : f32
    %11 = vector.broadcast %cst_6 : f32 to vector<16x128xf32>
    %12 = arith.subf %11, %8 : vector<16x128xf32>
    %13 = arith.mulf %10, %12 : vector<16x128xf32>
    %14 = arith.mulf %8, %9 : vector<16x128xf32>
    %15 = arith.addf %13, %14 : vector<16x128xf32>
    %c0_7 = arith.constant 0 : index
    %c0_8 = arith.constant 0 : index
    %16 = vector.load %arg5[%c0_7, %c0_8] : memref<16x128xf32, #tpu.memory_space<vmem>>, vector<16x128xf32>
    tpu.vector_store %arg5[%c0_7, %c0_8], %15 {strides = array<i32>} : memref<16x128xf32, #tpu.memory_space<vmem>>, vector<16x128xf32>,
    %c0_9 = arith.constant 0 : index
    %c0_10 = arith.constant 0 : index
    %17 = vector.load %arg6[%c0_9, %c0_10] : memref<16x128xf32, #tpu.memory_space<vmem>>, vector<16x128xf32>
    tpu.vector_store %arg6[%c0_9, %c0_10], %9 {strides = array<i32>} : memref<16x128xf32, #tpu.memory_space<vmem>>, vector<16x128xf32>,
    return
  }
  func.func @transform_0(%arg0: i32, %arg1: i32) -> (i32, i32) {
    %c0_i32 = arith.constant 0 : i32
    %c0_i32_0 = arith.constant 0 : i32
    return %arg0, %c0_i32 : i32, i32
  }
  func.func @transform_1(%arg0: i32, %arg1: i32) -> (i32, i32) {
    %c0_i32 = arith.constant 0 : i32
    %c0_i32_0 = arith.constant 0 : i32
    return %c0_i32, %arg1 : i32, i32
  }
  func.func @transform_2(%arg0: i32, %arg1: i32) -> (i32, i32) {
    %c0_i32 = arith.constant 0 : i32
    return %arg0, %arg1 : i32, i32
  }
  func.func @transform_3(%arg0: i32, %arg1: i32) -> (i32, i32) {
    %c0_i32 = arith.constant 0 : i32
    return %arg0, %arg1 : i32, i32
  }
  func.func @transform_4(%arg0: i32, %arg1: i32) -> (i32, i32) {
    %c0_i32 = arith.constant 0 : i32
    return %arg0, %arg1 : i32, i32
  }
}

</mosaic_0001>

<bundles_post_ra>
// kernel: _mingru_forward.1
= control target key start
LH: loop header
LB: loop body
LE: loop exit
PB: predicated region body
PF: predicated region fallthrough
CT: control target
= control target key end

     0   :  { %10 = vsyncpa [#allocation3], 0  ;;  %s291_s15 = smov [#allocation2]   ;;  %s344_s0 = inlined_call_operand.vmem [shape: bf16[16,128], index: 0, kind: input, shape index: {}]   ;;  %s345_s1 = inlined_call_operand.hbm [shape: bf16[128,256], index: 1, kind: input, shape index: {}]   ;;  %s346_s2 = inlined_call_operand.vmem [shape: f32[16,128], index: 2, kind: input, shape index: {}]   ;;  %s347_s3 = inlined_call_operand.vmem [shape: f32[16,128], index: 3, kind: output, shape index: {0}]   ;;  %s348_s4 = inlined_call_operand.vmem [shape: f32[16,128], index: 4, kind: output, shape index: {1}]  }
   0x1   :  { %s18_s16 = sshll.u32 %s291_s15, 4  ;;  %s19_s16 = int_to_ptr.vmem [resolvable:$true] %s18_s16 }
   0x2   :  { %s277_s17 = scalar_lea.vmem %s19_s16, 2048  ;;  %p282_p1 = scmp.lt.s32.totalorder %s19_s16, %s19_s16 }
   0x3   :  { %p278_p0 = scmp.ne.s32.totalorder %s19_s16, %s277_s17  ;;  %p283_p2 = scmp.lt.s32.totalorder %s277_s17, %s277_s17 }
   0x5   :  { %p284_p3 = por %p283_p2, %p282_p1 }
   0x7   :  { %p285_p4 = pnand %p284_p3, %p278_p0 }
   0x9   :  { %288 = shalt.err (!%p285_p4)
}
   0xa   :  { %s292_s18 = smov 128   ;;  %s293_s19 = smov 8  }
   0xb   :  { %24 = dma.hbm_to_vmem [thread:$0]  %s345_s1, 2048, %s19_s16, [#allocation3], %s292_s18, %s292_s18, %s293_s19  }
   0xc   :  { %289 = dma.done.wait [#allocation3], 2048  }
   0xd   :  { %290 = vsyncadd [#allocation3], 4294965248  ;;  %v294_v0 = vmov 0   ;;  %v236_v1 = vld [vmem:[#allocation2 + $0x74] ss:$8 sps:$4 sm:$0xff]   ;;  %v260_v17 = vld [vmem:[%s344_s0] sm:$0xff]  }
   0xe   :  { %167 = vmatprep.mubr.bf16.mxu0 %v294_v0  ;;  %v238_v2 = vld [vmem:[#allocation2 + $0x70] ss:$8 sps:$4 sm:$0xff]   ;;  %135 = vmatprep.subr.bf16.mxu0 %v236_v1  ;;  %v239_v3 = vld [vmem:[#allocation2 + $0x64] ss:$8 sps:$4 sm:$0xff]   ;;  %v241_v4 = vld [vmem:[#allocation2 + $0x60] ss:$8 sps:$4 sm:$0xff]  }
   0xf   :  { %136 = vmatpush1.bf16.msra.mxu0 %v238_v2  ;;  %v242_v5 = vld [vmem:[#allocation2 + $0x54] ss:$8 sps:$4 sm:$0xff]   ;;  %v244_v6 = vld [vmem:[#allocation2 + $0x50] ss:$8 sps:$4 sm:$0xff]   ;;  %v245_v7 = vld [vmem:[#allocation2 + $0x44] ss:$8 sps:$4 sm:$0xff]  }
  0x10   :  { %137 = vmatprep.subr.bf16.mxu0 %v239_v3  ;;  %v247_v8 = vld [vmem:[#allocation2 + $0x40] ss:$8 sps:$4 sm:$0xff]   ;;  %v248_v9 = vld [vmem:[#allocation2 + $0x34] ss:$8 sps:$4 sm:$0xff]   ;;  %v250_v10 = vld [vmem:[#allocation2 + $0x30] ss:$8 sps:$4 sm:$0xff]  }
  0x11   :  { %v251_v11 = vld [vmem:[#allocation2 + $0x24] ss:$8 sps:$4 sm:$0xff]   ;;  %v253_v12 = vld [vmem:[#allocation2 + $0x20] ss:$8 sps:$4 sm:$0xff]   ;;  %v254_v13 = vld [vmem:[#allocation2 + $0x14] ss:$8 sps:$4 sm:$0xff]  }
  0x12   :  { %v256_v14 = vld [vmem:[#allocation2 + $0x10] ss:$8 sps:$4 sm:$0xff]   ;;  %v257_v15 = vld [vmem:[#allocation2 + $0x4] ss:$8 sps:$4 sm:$0xff]   ;;  %v259_v16 = vld [vmem:[#allocation2] ss:$8 sps:$4 sm:$0xff]  }
  0x13   :  { %138 = vmatpush1.bf16.msra.mxu0 %v241_v4  ;;  %v190_v29 = vld [vmem:[%s346_s2] sm:$0xff]  ;;  %v191_v34 = vld [vmem:[%s346_s2 + $0x8] sm:$0xff] }
  0x14   :  { %139 = vmatprep.subr.bf16.mxu0 %v242_v5 }
  0x17   :  { %140 = vmatpush1.bf16.msra.mxu0 %v244_v6 }
  0x18   :  { %141 = vmatprep.subr.bf16.mxu0 %v245_v7 }
  0x1b   :  { %142 = vmatpush1.bf16.msra.mxu0 %v247_v8 }
  0x1c   :  { %143 = vmatprep.subr.bf16.mxu0 %v248_v9 }
  0x1f   :  { %144 = vmatpush1.bf16.msra.mxu0 %v250_v10 }
  0x20   :  { %145 = vmatprep.subr.bf16.mxu0 %v251_v11 }
  0x23   :  { %146 = vmatpush1.bf16.msra.mxu0 %v253_v12 }
  0x24   :  { %147 = vmatprep.subr.bf16.mxu0 %v254_v13 }
  0x27   :  { %148 = vmatpush1.bf16.msra.mxu0 %v256_v14 }
  0x28   :  { %149 = vmatprep.subr.bf16.mxu0 %v257_v15 }
  0x2b   :  { %150 = vmatpush1.bf16.msra.mxu0 %v259_v16 }
  0x2e   :  { %168 = vmatmul.mubr.bf16.vlgmr.msra.gmra.mxu0 %v260_v17 }
  0xee   :  { %v169_v18 = vpop.f32.mrf.mxu0 }
  0xef   :  { %v230_v19 = vmul.f32 -1.442695, %v169_v18 }
  0xf0   :  { %v171_v20 = vpop.f32.mrf.mxu0 }
  0xf1   :  { %261 = vpow2.f32 %v230_v19  ;;  %202 = vst [vmem:[%s348_s4] sm:$0xff] %v171_v20 }
  0xf2   :  { %v173_v21 = vpop.f32.mrf.mxu0 }
  0xf3   :  { %v231_v22 = vmul.f32 -1.442695, %v173_v21 }
  0xf4   :  { %v175_v23 = vpop.f32.mrf.mxu0 }
  0xf5   :  { %263 = vpow2.f32 %v231_v22  ;;  %203 = vst [vmem:[%s348_s4 + $0x8] sm:$0xff] %v175_v23 }
  0xfe   :  { %v262_v24 = vpop.eup %261 }
  0xff   :  { %v184_v25 = vadd.f32 1.0, %v262_v24 }
 0x101   :  { %265 = vrcp.f32 %v184_v25 }
 0x102   :  { %v264_v26 = vpop.eup %263 }
 0x103   :  { %v185_v27 = vadd.f32 1.0, %v264_v26 }
 0x105   :  { %267 = vrcp.f32 %v185_v27 }
 0x10e   :  { %v266_v28 = vpop.eup %265 }
 0x10f   :  { %v192_v30 = vsub.f32 1.0, %v266_v28  ;;  %v196_v32 = vmul.f32 %v266_v28, %v171_v20 }
 0x111   :  { %v194_v31 = vmul.f32 %v192_v30, %v190_v29 }
 0x112   :  { %v268_v33 = vpop.eup %267 }
 0x113   :  { %v198_v35 = vadd.f32 %v196_v32, %v194_v31  ;;  %v193_v36 = vsub.f32 1.0, %v268_v33  ;;  %v197_v38 = vmul.f32 %v268_v33, %v175_v23 }
 0x115   :  { %200 = vst [vmem:[%s347_s3] sm:$0xff] %v198_v35  ;;  %v195_v37 = vmul.f32 %v193_v36, %v191_v34 }
 0x117   :  { %v199_v39 = vadd.f32 %v197_v38, %v195_v37 }
 0x119   :  { %201 = vst [vmem:[%s347_s3 + $0x8] sm:$0xff] %v199_v39 }
 0x11a   :  { %212 = vsyncpa [#allocation3], 1 }

</bundles_post_ra>
